<compile_context>
chip_gen: v5e
topology: v5e:2x2
jax: 0.10.0
libtpu: 0.0.40
codegen_flags: <defaults>
</compile_context>

<pallas_src>
import jax
import jax.numpy as jnp
from jax.experimental import pallas as pl
from jax.experimental.pallas import tpu as pltpu

LRELU_SLOPE = 0.2


def _round_up(x, m):
    return (x + m - 1) // m * m


# ---------------------- single-buffering feature probe ------------------------

_SINGLE_BUFFER_OK = None


def _probe_single_buffering():
    """Eagerly check whether BlockSpec(pipeline_mode=pl.Buffered(1)) compiles."""
    global _SINGLE_BUFFER_OK
    if _SINGLE_BUFFER_OK is not None:
        return _SINGLE_BUFFER_OK
    ok = False
    if hasattr(pl, "Buffered"):
        try:
            def _copy(x_ref, o_ref):
                o_ref[...] = x_ref[...]
            spec = pl.BlockSpec((8, 128), lambda i: (0, 0),
                                pipeline_mode=pl.Buffered(1))
            out = pl.pallas_call(
                _copy,
                out_shape=jax.ShapeDtypeStruct((8, 128), jnp.float32),
                grid=(1,),
                in_specs=[spec],
                out_specs=pl.BlockSpec((8, 128), lambda i: (0, 0)),
            )(jnp.ones((8, 128), jnp.float32))
            jax.block_until_ready(out)
            ok = True
        except Exception:
            ok = False
    _SINGLE_BUFFER_OK = ok
    return ok


def _const_spec(block_shape, index_map):
    """BlockSpec for a grid-invariant operand; single-buffered when supported."""
    if _SINGLE_BUFFER_OK:
        return pl.BlockSpec(block_shape, index_map, pipeline_mode=pl.Buffered(1))
    return pl.BlockSpec(block_shape, index_map)


def _vmem_limit_bytes():
    cap = 64 * 1024 * 1024
    try:
        info = pltpu.get_tpu_info()
        cap = int(getattr(info, "vmem_capacity_bytes", cap) or cap)
    except Exception:
        pass
    # ~3/4 of physical VMEM, capped at 96 MiB (v5e/v6e: 128 MiB, v7x: 64 MiB).
    return min(cap * 3 // 4, 96 * 1024 * 1024)


# ------------------------- Pallas kernel (fused block) -------------------------

def _make_dblock_kernel(Wc, Cin, Cout, L1, Lo):
    """Kernel closure.  Wc = W+4 (canvas width), L1 = conv1 window, Lo = output."""
    taps = [(t // 3) * Wc + (t % 3) for t in range(9)]

    def kernel(x_ref, w1_ref, b1_ref, w2_ref, b2_ref, mask_ref, o_ref,
               xs_ref, y1_ref, ys_ref):
        # x_ref   : (1, Cin, Lcp)    bf16 zero-padded (2-ring) flattened canvas
        # w1_ref  : (Cout, 9*Cin)    bf16 stacked-K conv1 weights (eq-LR scaled)
        # b1_ref  : (Cout, 1)        f32
        # w2_ref  : (Cout, 9*Cout)   bf16 stacked-K conv2 weights (eq-LR scaled)
        # b2_ref  : (Cout, 1)        f32
        # mask_ref: (1, L1)          f32 interior mask (== conv2's zero padding)
        # o_ref   : (1, Cout, Lo)    f32 2x2-pool partial sums, lane-dense/aligned
        # xs_ref  : (9*Cin, L1)      bf16 scratch: stacked conv1 operand
        # y1_ref  : (Cout, L1)       bf16 scratch: masked conv1 activation
        # ys_ref  : (9*Cout, Lo)     bf16 scratch: stacked conv2 operand

        # ---- conv1: stage stacked-K operand (taps-major), one MXU matmul ----
        for t, s in enumerate(taps):
            xs_ref[t * Cin:(t + 1) * Cin, :] = x_ref[0, :, s:s + L1]
        y1 = jnp.dot(w1_ref[...], xs_ref[...],
                     preferred_element_type=jnp.float32)
        y1 = y1 + b1_ref[...]
        y1 = jnp.maximum(y1, LRELU_SLOPE * y1)
        # Zero everything outside the true image interior: this IS conv2's
        # implicit zero padding (padding=1) in the flat-canvas layout.
        y1_ref[...] = (y1 * mask_ref[...]).astype(jnp.bfloat16)

        # ---- conv2: stage stacked-K operand from VMEM-resident y1, one matmul ----
        for t, s in enumerate(taps):
            ys_ref[t * Cout:(t + 1) * Cout, :] = y1_ref[:, s:s + Lo]
        y2 = jnp.dot(w2_ref[...], ys_ref[...],
                     preferred_element_type=jnp.float32)
        y2 = y2 + b2_ref[...]
        y2 = jnp.maximum(y2, LRELU_SLOPE * y2)

        # ---- fused 2x2/stride-2 avg-pool partial sums:
        #      psum[r] = y2[r] + y2[r+1] + y2[r+Wc] + y2[r+Wc+1]
        #      (epilogue only strided-slices the even (row, col) lanes * 0.25)
        z1 = jnp.zeros((y2.shape[0], 1), jnp.float32)
        zw = jnp.zeros((y2.shape[0], Wc), jnp.float32)
        ph = y2 + jnp.concatenate([y2[:, 1:], z1], axis=1)
        o_ref[0] = ph + jnp.concatenate([ph[:, Wc:], zw], axis=1)

    return kernel


# -------------------------------- JAX wrapper ----------------------------------

def d_block_forward(x_nchw, w1, b1, w2, b2):
    """D_Block(in_ch, out_ch, initial_block=False) forward.  NCHW in, NCHW out."""
    N, Cin, H, W = x_nchw.shape
    Cout = w1.shape[0]
    assert H % 2 == 0 and W % 2 == 0
    assert w1.shape == (Cout, Cin, 3, 3) and w2.shape == (Cout, Cout, 3, 3)

    Hc, Wc = H + 4, W + 4                 # 2-ring zero-padded canvas
    Lc = Hc * Wc
    Lo = _round_up(H * Wc, 128)           # 128-aligned lane-dense output width
    L1 = Lo + 2 * (Wc + 1)                # conv1 output / conv2 input window
    Lcp = L1 + 2 * (Wc + 1)               # padded canvas length (>= Lc)
    H2, W2 = H // 2, W // 2

    # bf16 padded canvas, flattened spatial on the lane axis (NCHW throughout).
    xp = jnp.pad(x_nchw.astype(jnp.bfloat16), ((0, 0), (0, 0), (2, 2), (2, 2)))
    xp = xp.reshape(N, Cin, Lc)
    xp = jnp.pad(xp, ((0, 0), (0, 0), (0, Lcp - Lc)))

    # Equalized-LR scaling: sqrt(2 / (in_ch * kh * kw)), applied at forward time.
    s1 = (2.0 / (Cin * 9)) ** 0.5
    s2 = (2.0 / (Cout * 9)) ** 0.5
    # Stacked-K weight layout (taps-major): column index = t*Cin + c, t = kh*3+kw.
    w1s = (jnp.transpose(w1.astype(jnp.float32), (0, 2, 3, 1)) * s1
           ).reshape(Cout, 9 * Cin).astype(jnp.bfloat16)
    w2s = (jnp.transpose(w2.astype(jnp.float32), (0, 2, 3, 1)) * s2
           ).reshape(Cout, 9 * Cout).astype(jnp.bfloat16)
    b1c = b1.reshape(Cout, 1).astype(jnp.float32)
    b2c = b2.reshape(Cout, 1).astype(jnp.float32)

    # Interior mask over the conv1 window: lane r <-> canvas position (Wc+1)+r.
    q = jnp.arange(L1) + (Wc + 1)
    hq, wq = q // Wc, q % Wc
    mask = (((hq >= 2) & (hq <= H + 1) & (wq >= 2) & (wq <= W + 1))
            .astype(jnp.float32).reshape(1, L1))

    flops = 2 * N * (9 * Cin * Cout * L1 + 9 * Cout * Cout * Lo) + 4 * N * Cout * Lo
    bytes_accessed = (2 * (xp.size + w1s.size + w2s.size)
                      + 4 * (b1c.size + b2c.size + mask.size + N * Cout * Lo))

    psum = pl.pallas_call(
        _make_dblock_kernel(Wc, Cin, Cout, L1, Lo),
        out_shape=jax.ShapeDtypeStruct((N, Cout, Lo), jnp.float32),
        grid=(N,),
        in_specs=[
            pl.BlockSpec((1, Cin, Lcp), lambda n: (n, 0, 0)),
            _const_spec((Cout, 9 * Cin), lambda n: (0, 0)),
            _const_spec((Cout, 1), lambda n: (0, 0)),
            _const_spec((Cout, 9 * Cout), lambda n: (0, 0)),
            _const_spec((Cout, 1), lambda n: (0, 0)),
            _const_spec((1, L1), lambda n: (0, 0)),
        ],
        out_specs=pl.BlockSpec((1, Cout, Lo), lambda n: (n, 0, 0)),
        scratch_shapes=[
            pltpu.VMEM((9 * Cin, L1), jnp.bfloat16),    # stacked conv1 operand
            pltpu.VMEM((Cout, L1), jnp.bfloat16),       # masked conv1 activation
            pltpu.VMEM((9 * Cout, Lo), jnp.bfloat16),   # stacked conv2 operand
        ],
        compiler_params=pltpu.CompilerParams(
            dimension_semantics=("parallel",),
            vmem_limit_bytes=_vmem_limit_bytes()),
        cost_estimate=pl.CostEstimate(flops=flops, transcendentals=0,
                                      bytes_accessed=bytes_accessed),
    )(xp, w1s, b1c, w2s, b2c, mask)

    # Epilogue: strided decimation of the in-kernel 2x2 partial sums.
    ps = psum[:, :, :H * Wc].reshape(N, Cout, H, Wc)
    return ps[:, :, ::2, 0:W:2] * 0.25          # (N, Cout, H/2, W/2), NCHW


# --------------------------------- reference ------------------------------------

def _reference(x, w1, b1, w2, b2):
    Cin, Cout = x.shape[1], w1.shape[0]
    s1 = (2.0 / (Cin * 9)) ** 0.5
    s2 = (2.0 / (Cout * 9)) ** 0.5

    def conv(t, w, b, s):
        y = jax.lax.conv_general_dilated(
            t, w * s, window_strides=(1, 1), padding=((1, 1), (1, 1)),
            dimension_numbers=("NCHW", "OIHW", "NCHW"))
        return y + b.reshape(1, -1, 1, 1)

    lrelu = lambda t: jnp.maximum(t, LRELU_SLOPE * t)
    y = lrelu(conv(x, w1, b1, s1))
    y = lrelu(conv(y, w2, b2, s2))
    N, C, H, W = y.shape
    return y.reshape(N, C, H // 2, 2, W // 2, 2).mean(axis=(3, 5))


# ----------------------------------- main ---------------------------------------

if __name__ == "__main__":
    in_ch, out_ch = 4, 8
    N, H, W = 2, 16, 16

    key = jax.random.PRNGKey(0)
    kx, kw1, kw2 = jax.random.split(key, 3)
    x = jax.random.normal(kx, (N, in_ch, H, W), dtype=jnp.float32)
    # nn.init.normal_ -> N(0, 1); nn.init.zeros_ for biases.
    w1 = jax.random.normal(kw1, (out_ch, in_ch, 3, 3), dtype=jnp.float32)
    b1 = jnp.zeros((out_ch,), dtype=jnp.float32)
    w2 = jax.random.normal(kw2, (out_ch, out_ch, 3, 3), dtype=jnp.float32)
    b2 = jnp.zeros((out_ch,), dtype=jnp.float32)

    _probe_single_buffering()     # eager feature probe (outside jit)

    fwd = jax.jit(d_block_forward)
    out = jax.block_until_ready(fwd(x, w1, b1, w2, b2))
    ref = jax.block_until_ready(_reference(x, w1, b1, w2, b2))

    assert out.shape == (N, out_ch, H // 2, W // 2), out.shape
    max_err = float(jnp.max(jnp.abs(out - ref)))
    # bf16 MXU operands vs f32 reference -> loosened tolerance.
    assert jnp.allclose(out, ref, rtol=7.5e-2, atol=7.5e-2), max_err

    print("KERNEL_OK")
</pallas_src>

<mosaic_0001>
module attributes {stable_mosaic.version = 11 : i64} {
  func.func @_copy(%arg0: i32, %arg1: memref<8x128xf32, #tpu.memory_space<vmem>>, %arg2: memref<8x128xf32, #tpu.memory_space<vmem>>) attributes {dimension_semantics = [#tpu.dimension_semantics<arbitrary>], iteration_bounds = array<i64: 1>, scalar_prefetch = 0 : i64, scratch_operands = 0 : i64, tpu.core_type = #tpu.core_type<tc>, window_params = [{pipeline_mode = #tpu.pipeline_mode<synchronous>, transform_indices = @transform_0, window_bounds = array<i64: 8, 128>}, {pipeline_mode = #tpu.pipeline_mode<synchronous>, transform_indices = @transform_1, window_bounds = array<i64: 8, 128>}]} {
    %c0 = arith.constant 0 : index
    %c0_0 = arith.constant 0 : index
    %0 = vector.load %arg1[%c0, %c0_0] : memref<8x128xf32, #tpu.memory_space<vmem>>, vector<8x128xf32>
    %c0_1 = arith.constant 0 : index
    %c0_2 = arith.constant 0 : index
    %1 = vector.load %arg2[%c0_1, %c0_2] : memref<8x128xf32, #tpu.memory_space<vmem>>, vector<8x128xf32>
    tpu.vector_store %arg2[%c0_1, %c0_2], %0 {strides = array<i32>} : memref<8x128xf32, #tpu.memory_space<vmem>>, vector<8x128xf32>,
    return
  }
  func.func @transform_0(%arg0: i32) -> (i32, i32) {
    %c0_i32 = arith.constant 0 : i32
    %c0_i32_0 = arith.constant 0 : i32
    %c0_i32_1 = arith.constant 0 : i32
    return %c0_i32, %c0_i32_0 : i32, i32
  }
  func.func @transform_1(%arg0: i32) -> (i32, i32) {
    %c0_i32 = arith.constant 0 : i32
    %c0_i32_0 = arith.constant 0 : i32
    %c0_i32_1 = arith.constant 0 : i32
    return %c0_i32, %c0_i32_0 : i32, i32
  }
}

module attributes {stable_mosaic.version = 11 : i64} {
  func.func @kernel(%arg0: i32, %arg1: memref<1x4x468xbf16, #tpu.memory_space<vmem>>, %arg2: memref<8x36xbf16, #tpu.memory_space<vmem>>, %arg3: memref<8x1xf32, #tpu.memory_space<vmem>>, %arg4: memref<8x72xbf16, #tpu.memory_space<vmem>>, %arg5: memref<8x1xf32, #tpu.memory_space<vmem>>, %arg6: memref<1x426xf32, #tpu.memory_space<vmem>>, %arg7: memref<1x8x384xf32, #tpu.memory_space<vmem>>, %arg8: memref<36x426xbf16, #tpu.memory_space<vmem>>, %arg9: memref<8x426xbf16, #tpu.memory_space<vmem>>, %arg10: memref<72x384xbf16, #tpu.memory_space<vmem>>) attributes {dimension_semantics = [#tpu.dimension_semantics<parallel>], iteration_bounds = array<i64: 2>, scalar_prefetch = 0 : i64, scratch_operands = 3 : i64, tpu.core_type = #tpu.core_type<tc>, window_params = [{transform_indices = @transform_0, window_bounds = array<i64: 1, 4, 468>}, {pipeline_mode = #tpu.pipeline_mode<synchronous>, transform_indices = @transform_1, window_bounds = array<i64: 8, 36>}, {pipeline_mode = #tpu.pipeline_mode<synchronous>, transform_indices = @transform_2, window_bounds = array<i64: 8, 1>}, {pipeline_mode = #tpu.pipeline_mode<synchronous>, transform_indices = @transform_3, window_bounds = array<i64: 8, 72>}, {pipeline_mode = #tpu.pipeline_mode<synchronous>, transform_indices = @transform_4, window_bounds = array<i64: 8, 1>}, {pipeline_mode = #tpu.pipeline_mode<synchronous>, transform_indices = @transform_5, window_bounds = array<i64: 1, 426>}, {transform_indices = @transform_6, window_bounds = array<i64: 1, 8, 384>}]} {
    %c0 = arith.constant 0 : index
    %c0_0 = arith.constant 0 : index
    %c0_1 = arith.constant 0 : index
    %0 = vector.load %arg1[%c0, %c0_0, %c0_1] : memref<1x4x468xbf16, #tpu.memory_space<vmem>>, vector<1x4x426xbf16>
    %1 = vector.shape_cast %0 : vector<1x4x426xbf16> to vector<4x426xbf16>
    %c0_2 = arith.constant 0 : index
    %c0_3 = arith.constant 0 : index
    %2 = vector.load %arg8[%c0_2, %c0_3] : memref<36x426xbf16, #tpu.memory_space<vmem>>, vector<4x426xbf16>
    tpu.vector_store %arg8[%c0_2, %c0_3], %1 {strides = array<i32>} : memref<36x426xbf16, #tpu.memory_space<vmem>>, vector<4x426xbf16>,
    %c0_4 = arith.constant 0 : index
    %c0_5 = arith.constant 0 : index
    %c1 = arith.constant 1 : index
    %3 = vector.load %arg1[%c0_4, %c0_5, %c1] : memref<1x4x468xbf16, #tpu.memory_space<vmem>>, vector<1x4x426xbf16>
    %4 = vector.shape_cast %3 : vector<1x4x426xbf16> to vector<4x426xbf16>
    %c4 = arith.constant 4 : index
    %c0_6 = arith.constant 0 : index
    %5 = vector.load %arg8[%c4, %c0_6] : memref<36x426xbf16, #tpu.memory_space<vmem>>, vector<4x426xbf16>
    tpu.vector_store %arg8[%c4, %c0_6], %4 {strides = array<i32>} : memref<36x426xbf16, #tpu.memory_space<vmem>>, vector<4x426xbf16>,
    %c0_7 = arith.constant 0 : index
    %c0_8 = arith.constant 0 : index
    %c2 = arith.constant 2 : index
    %6 = vector.load %arg1[%c0_7, %c0_8, %c2] : memref<1x4x468xbf16, #tpu.memory_space<vmem>>, vector<1x4x426xbf16>
    %7 = vector.shape_cast %6 : vector<1x4x426xbf16> to vector<4x426xbf16>
    %c8 = arith.constant 8 : index
    %c0_9 = arith.constant 0 : index
    %8 = vector.load %arg8[%c8, %c0_9] : memref<36x426xbf16, #tpu.memory_space<vmem>>, vector<4x426xbf16>
    tpu.vector_store %arg8[%c8, %c0_9], %7 {strides = array<i32>} : memref<36x426xbf16, #tpu.memory_space<vmem>>, vector<4x426xbf16>,
    %c0_10 = arith.constant 0 : index
    %c0_11 = arith.constant 0 : index
    %c20 = arith.constant 20 : index
    %9 = vector.load %arg1[%c0_10, %c0_11, %c20] : memref<1x4x468xbf16, #tpu.memory_space<vmem>>, vector<1x4x426xbf16>
    %10 = vector.shape_cast %9 : vector<1x4x426xbf16> to vector<4x426xbf16>
    %c12 = arith.constant 12 : index
    %c0_12 = arith.constant 0 : index
    %11 = vector.load %arg8[%c12, %c0_12] : memref<36x426xbf16, #tpu.memory_space<vmem>>, vector<4x426xbf16>
    tpu.vector_store %arg8[%c12, %c0_12], %10 {strides = array<i32>} : memref<36x426xbf16, #tpu.memory_space<vmem>>, vector<4x426xbf16>,
    %c0_13 = arith.constant 0 : index
    %c0_14 = arith.constant 0 : index
    %c21 = arith.constant 21 : index
    %12 = vector.load %arg1[%c0_13, %c0_14, %c21] : memref<1x4x468xbf16, #tpu.memory_space<vmem>>, vector<1x4x426xbf16>
    %13 = vector.shape_cast %12 : vector<1x4x426xbf16> to vector<4x426xbf16>
    %c16 = arith.constant 16 : index
    %c0_15 = arith.constant 0 : index
    %14 = vector.load %arg8[%c16, %c0_15] : memref<36x426xbf16, #tpu.memory_space<vmem>>, vector<4x426xbf16>
    tpu.vector_store %arg8[%c16, %c0_15], %13 {strides = array<i32>} : memref<36x426xbf16, #tpu.memory_space<vmem>>, vector<4x426xbf16>,
    %c0_16 = arith.constant 0 : index
    %c0_17 = arith.constant 0 : index
    %c22 = arith.constant 22 : index
    %15 = vector.load %arg1[%c0_16, %c0_17, %c22] : memref<1x4x468xbf16, #tpu.memory_space<vmem>>, vector<1x4x426xbf16>
    %16 = vector.shape_cast %15 : vector<1x4x426xbf16> to vector<4x426xbf16>
    %c20_18 = arith.constant 20 : index
    %c0_19 = arith.constant 0 : index
    %17 = vector.load %arg8[%c20_18, %c0_19] : memref<36x426xbf16, #tpu.memory_space<vmem>>, vector<4x426xbf16>
    tpu.vector_store %arg8[%c20_18, %c0_19], %16 {strides = array<i32>} : memref<36x426xbf16, #tpu.memory_space<vmem>>, vector<4x426xbf16>,
    %c0_20 = arith.constant 0 : index
    %c0_21 = arith.constant 0 : index
    %c40 = arith.constant 40 : index
    %18 = vector.load %arg1[%c0_20, %c0_21, %c40] : memref<1x4x468xbf16, #tpu.memory_space<vmem>>, vector<1x4x426xbf16>
    %19 = vector.shape_cast %18 : vector<1x4x426xbf16> to vector<4x426xbf16>
    %c24 = arith.constant 24 : index
    %c0_22 = arith.constant 0 : index
    %20 = vector.load %arg8[%c24, %c0_22] : memref<36x426xbf16, #tpu.memory_space<vmem>>, vector<4x426xbf16>
    tpu.vector_store %arg8[%c24, %c0_22], %19 {strides = array<i32>} : memref<36x426xbf16, #tpu.memory_space<vmem>>, vector<4x426xbf16>,
    %c0_23 = arith.constant 0 : index
    %c0_24 = arith.constant 0 : index
    %c41 = arith.constant 41 : index
    %21 = vector.load %arg1[%c0_23, %c0_24, %c41] : memref<1x4x468xbf16, #tpu.memory_space<vmem>>, vector<1x4x426xbf16>
    %22 = vector.shape_cast %21 : vector<1x4x426xbf16> to vector<4x426xbf16>
    %c28 = arith.constant 28 : index
    %c0_25 = arith.constant 0 : index
    %23 = vector.load %arg8[%c28, %c0_25] : memref<36x426xbf16, #tpu.memory_space<vmem>>, vector<4x426xbf16>
    tpu.vector_store %arg8[%c28, %c0_25], %22 {strides = array<i32>} : memref<36x426xbf16, #tpu.memory_space<vmem>>, vector<4x426xbf16>,
    %c0_26 = arith.constant 0 : index
    %c0_27 = arith.constant 0 : index
    %c42 = arith.constant 42 : index
    %24 = vector.load %arg1[%c0_26, %c0_27, %c42] : memref<1x4x468xbf16, #tpu.memory_space<vmem>>, vector<1x4x426xbf16>
    %25 = vector.shape_cast %24 : vector<1x4x426xbf16> to vector<4x426xbf16>
    %c32 = arith.constant 32 : index
    %c0_28 = arith.constant 0 : index
    %26 = vector.load %arg8[%c32, %c0_28] : memref<36x426xbf16, #tpu.memory_space<vmem>>, vector<4x426xbf16>
    tpu.vector_store %arg8[%c32, %c0_28], %25 {strides = array<i32>} : memref<36x426xbf16, #tpu.memory_space<vmem>>, vector<4x426xbf16>,
    %c0_29 = arith.constant 0 : index
    %c0_30 = arith.constant 0 : index
    %27 = vector.load %arg2[%c0_29, %c0_30] : memref<8x36xbf16, #tpu.memory_space<vmem>>, vector<8x36xbf16>
    %c0_31 = arith.constant 0 : index
    %c0_32 = arith.constant 0 : index
    %28 = vector.load %arg8[%c0_31, %c0_32] : memref<36x426xbf16, #tpu.memory_space<vmem>>, vector<36x426xbf16>
    %cst = arith.constant dense<0.000000e+00> : vector<8x426xf32>
    %29 = tpu.matmul %27, %28, %cst {dimension_numbers = #tpu.dot_dimension_numbers<[1], [0], [0], [1], [0, 0, 1, 1], [], []>} : vector<8x36xbf16>, vector<36x426xbf16>, vector<8x426xf32> -> vector<8x426xf32>
    %c0_33 = arith.constant 0 : index
    %c0_34 = arith.constant 0 : index
    %30 = vector.load %arg3[%c0_33, %c0_34] : memref<8x1xf32, #tpu.memory_space<vmem>>, vector<8x1xf32>
    %31 = vector.broadcast %30 : vector<8x1xf32> to vector<8x426xf32>
    %32 = arith.addf %29, %31 : vector<8x426xf32>
    %cst_35 = arith.constant 2.000000e-01 : f32
    %33 = vector.broadcast %cst_35 : f32 to vector<8x426xf32>
    %34 = arith.mulf %33, %32 : vector<8x426xf32>
    %35 = arith.maximumf %32, %34 : vector<8x426xf32>
    %c0_36 = arith.constant 0 : index
    %c0_37 = arith.constant 0 : index
    %36 = vector.load %arg6[%c0_36, %c0_37] : memref<1x426xf32, #tpu.memory_space<vmem>>, vector<1x426xf32>
    %37 = vector.broadcast %36 : vector<1x426xf32> to vector<8x426xf32>
    %38 = arith.mulf %35, %37 : vector<8x426xf32>
    %39 = arith.truncf %38 : vector<8x426xf32> to vector<8x426xbf16>
    %c0_38 = arith.constant 0 : index
    %c0_39 = arith.constant 0 : index
    %40 = vector.load %arg9[%c0_38, %c0_39] : memref<8x426xbf16, #tpu.memory_space<vmem>>, vector<8x426xbf16>
    tpu.vector_store %arg9[%c0_38, %c0_39], %39 {strides = array<i32>} : memref<8x426xbf16, #tpu.memory_space<vmem>>, vector<8x426xbf16>,
    %c0_40 = arith.constant 0 : index
    %c0_41 = arith.constant 0 : index
    %41 = vector.load %arg9[%c0_40, %c0_41] : memref<8x426xbf16, #tpu.memory_space<vmem>>, vector<8x384xbf16>
    %c0_42 = arith.constant 0 : index
    %c0_43 = arith.constant 0 : index
    %42 = vector.load %arg10[%c0_42, %c0_43] : memref<72x384xbf16, #tpu.memory_space<vmem>>, vector<8x384xbf16>
    tpu.vector_store %arg10[%c0_42, %c0_43], %41 {strides = array<i32>} : memref<72x384xbf16, #tpu.memory_space<vmem>>, vector<8x384xbf16>,
    %c0_44 = arith.constant 0 : index
    %c1_45 = arith.constant 1 : index
    %43 = vector.load %arg9[%c0_44, %c1_45] : memref<8x426xbf16, #tpu.memory_space<vmem>>, vector<8x384xbf16>
    %c8_46 = arith.constant 8 : index
    %c0_47 = arith.constant 0 : index
    %44 = vector.load %arg10[%c8_46, %c0_47] : memref<72x384xbf16, #tpu.memory_space<vmem>>, vector<8x384xbf16>
    tpu.vector_store %arg10[%c8_46, %c0_47], %43 {strides = array<i32>} : memref<72x384xbf16, #tpu.memory_space<vmem>>, vector<8x384xbf16>,
    %c0_48 = arith.constant 0 : index
    %c2_49 = arith.constant 2 : index
    %45 = vector.load %arg9[%c0_48, %c2_49] : memref<8x426xbf16, #tpu.memory_space<vmem>>, vector<8x384xbf16>
    %c16_50 = arith.constant 16 : index
    %c0_51 = arith.constant 0 : index
    %46 = vector.load %arg10[%c16_50, %c0_51] : memref<72x384xbf16, #tpu.memory_space<vmem>>, vector<8x384xbf16>
    tpu.vector_store %arg10[%c16_50, %c0_51], %45 {strides = array<i32>} : memref<72x384xbf16, #tpu.memory_space<vmem>>, vector<8x384xbf16>,
    %c0_52 = arith.constant 0 : index
    %c20_53 = arith.constant 20 : index
    %47 = vector.load %arg9[%c0_52, %c20_53] : memref<8x426xbf16, #tpu.memory_space<vmem>>, vector<8x384xbf16>
    %c24_54 = arith.constant 24 : index
    %c0_55 = arith.constant 0 : index
    %48 = vector.load %arg10[%c24_54, %c0_55] : memref<72x384xbf16, #tpu.memory_space<vmem>>, vector<8x384xbf16>
    tpu.vector_store %arg10[%c24_54, %c0_55], %47 {strides = array<i32>} : memref<72x384xbf16, #tpu.memory_space<vmem>>, vector<8x384xbf16>,
    %c0_56 = arith.constant 0 : index
    %c21_57 = arith.constant 21 : index
    %49 = vector.load %arg9[%c0_56, %c21_57] : memref<8x426xbf16, #tpu.memory_space<vmem>>, vector<8x384xbf16>
    %c32_58 = arith.constant 32 : index
    %c0_59 = arith.constant 0 : index
    %50 = vector.load %arg10[%c32_58, %c0_59] : memref<72x384xbf16, #tpu.memory_space<vmem>>, vector<8x384xbf16>
    tpu.vector_store %arg10[%c32_58, %c0_59], %49 {strides = array<i32>} : memref<72x384xbf16, #tpu.memory_space<vmem>>, vector<8x384xbf16>,
    %c0_60 = arith.constant 0 : index
    %c22_61 = arith.constant 22 : index
    %51 = vector.load %arg9[%c0_60, %c22_61] : memref<8x426xbf16, #tpu.memory_space<vmem>>, vector<8x384xbf16>
    %c40_62 = arith.constant 40 : index
    %c0_63 = arith.constant 0 : index
    %52 = vector.load %arg10[%c40_62, %c0_63] : memref<72x384xbf16, #tpu.memory_space<vmem>>, vector<8x384xbf16>
    tpu.vector_store %arg10[%c40_62, %c0_63], %51 {strides = array<i32>} : memref<72x384xbf16, #tpu.memory_space<vmem>>, vector<8x384xbf16>,
    %c0_64 = arith.constant 0 : index
    %c40_65 = arith.constant 40 : index
    %53 = vector.load %arg9[%c0_64, %c40_65] : memref<8x426xbf16, #tpu.memory_space<vmem>>, vector<8x384xbf16>
    %c48 = arith.constant 48 : index
    %c0_66 = arith.constant 0 : index
    %54 = vector.load %arg10[%c48, %c0_66] : memref<72x384xbf16, #tpu.memory_space<vmem>>, vector<8x384xbf16>
    tpu.vector_store %arg10[%c48, %c0_66], %53 {strides = array<i32>} : memref<72x384xbf16, #tpu.memory_space<vmem>>, vector<8x384xbf16>,
    %c0_67 = arith.constant 0 : index
    %c41_68 = arith.constant 41 : index
    %55 = vector.load %arg9[%c0_67, %c41_68] : memref<8x426xbf16, #tpu.memory_space<vmem>>, vector<8x384xbf16>
    %c56 = arith.constant 56 : index
    %c0_69 = arith.constant 0 : index
    %56 = vector.load %arg10[%c56, %c0_69] : memref<72x384xbf16, #tpu.memory_space<vmem>>, vector<8x384xbf16>
    tpu.vector_store %arg10[%c56, %c0_69], %55 {strides = array<i32>} : memref<72x384xbf16, #tpu.memory_space<vmem>>, vector<8x384xbf16>,
    %c0_70 = arith.constant 0 : index
    %c42_71 = arith.constant 42 : index
    %57 = vector.load %arg9[%c0_70, %c42_71] : memref<8x426xbf16, #tpu.memory_space<vmem>>, vector<8x384xbf16>
    %c64 = arith.constant 64 : index
    %c0_72 = arith.constant 0 : index
    %58 = vector.load %arg10[%c64, %c0_72] : memref<72x384xbf16, #tpu.memory_space<vmem>>, vector<8x384xbf16>
    tpu.vector_store %arg10[%c64, %c0_72], %57 {strides = array<i32>} : memref<72x384xbf16, #tpu.memory_space<vmem>>, vector<8x384xbf16>,
    %c0_73 = arith.constant 0 : index
    %c0_74 = arith.constant 0 : index
    %59 = vector.load %arg4[%c0_73, %c0_74] : memref<8x72xbf16, #tpu.memory_space<vmem>>, vector<8x72xbf16>
    %c0_75 = arith.constant 0 : index
    %c0_76 = arith.constant 0 : index
    %60 = vector.load %arg10[%c0_75, %c0_76] : memref<72x384xbf16, #tpu.memory_space<vmem>>, vector<72x384xbf16>
    %cst_77 = arith.constant dense<0.000000e+00> : vector<8x384xf32>
    %61 = tpu.matmul %59, %60, %cst_77 {dimension_numbers = #tpu.dot_dimension_numbers<[1], [0], [0], [1], [0, 0, 1, 1], [], []>} : vector<8x72xbf16>, vector<72x384xbf16>, vector<8x384xf32> -> vector<8x384xf32>
    %c0_78 = arith.constant 0 : index
    %c0_79 = arith.constant 0 : index
    %62 = vector.load %arg5[%c0_78, %c0_79] : memref<8x1xf32, #tpu.memory_space<vmem>>, vector<8x1xf32>
    %63 = vector.broadcast %62 : vector<8x1xf32> to vector<8x384xf32>
    %64 = arith.addf %61, %63 : vector<8x384xf32>
    %cst_80 = arith.constant 2.000000e-01 : f32
    %65 = vector.broadcast %cst_80 : f32 to vector<8x384xf32>
    %66 = arith.mulf %65, %64 : vector<8x384xf32>
    %67 = arith.maximumf %64, %66 : vector<8x384xf32>
    %cst_81 = arith.constant 0.000000e+00 : f32
    %68 = vector.broadcast %cst_81 : f32 to vector<8x1xf32>
    %cst_82 = arith.constant 0.000000e+00 : f32
    %69 = vector.broadcast %cst_82 : f32 to vector<8x20xf32>
    %70 = vector.extract_strided_slice %67 {offsets = [0, 1], sizes = [8, 383], strides = [1, 1]} : vector<8x384xf32> to vector<8x383xf32>
    %71 = tpu.concatenate %70, %68 in 1 : vector<8x383xf32>, vector<8x1xf32> -> vector<8x384xf32>
    %72 = arith.addf %67, %71 : vector<8x384xf32>
    %73 = vector.extract_strided_slice %72 {offsets = [0, 20], sizes = [8, 364], strides = [1, 1]} : vector<8x384xf32> to vector<8x364xf32>
    %74 = tpu.concatenate %73, %69 in 1 : vector<8x364xf32>, vector<8x20xf32> -> vector<8x384xf32>
    %75 = arith.addf %72, %74 : vector<8x384xf32>
    %c0_83 = arith.constant 0 : index
    %c0_84 = arith.constant 0 : index
    %c0_85 = arith.constant 0 : index
    %76 = vector.load %arg7[%c0_83, %c0_84, %c0_85] : memref<1x8x384xf32, #tpu.memory_space<vmem>>, vector<1x8x384xf32>
    %77 = vector.shape_cast %76 : vector<1x8x384xf32> to vector<8x384xf32>
    %78 = vector.shape_cast %75 : vector<8x384xf32> to vector<1x8x384xf32>
    tpu.vector_store %arg7[%c0_83, %c0_84, %c0_85], %78 {strides = array<i32>} : memref<1x8x384xf32, #tpu.memory_space<vmem>>, vector<1x8x384xf32>,
    return
  }
  func.func @transform_0(%arg0: i32) -> (i32, i32, i32) {
    %c0_i32 = arith.constant 0 : i32
    %c0_i32_0 = arith.constant 0 : i32
    %c0_i32_1 = arith.constant 0 : i32
    return %arg0, %c0_i32, %c0_i32_0 : i32, i32, i32
  }
  func.func @transform_1(%arg0: i32) -> (i32, i32) {
    %c0_i32 = arith.constant 0 : i32
    %c0_i32_0 = arith.constant 0 : i32
    %c0_i32_1 = arith.constant 0 : i32
    return %c0_i32, %c0_i32_0 : i32, i32
  }
  func.func @transform_2(%arg0: i32) -> (i32, i32) {
    %c0_i32 = arith.constant 0 : i32
    %c0_i32_0 = arith.constant 0 : i32
    %c0_i32_1 = arith.constant 0 : i32
    return %c0_i32, %c0_i32_0 : i32, i32
  }
  func.func @transform_3(%arg0: i32) -> (i32, i32) {
    %c0_i32 = arith.constant 0 : i32
    %c0_i32_0 = arith.constant 0 : i32
    %c0_i32_1 = arith.constant 0 : i32
    return %c0_i32, %c0_i32_0 : i32, i32
  }
  func.func @transform_4(%arg0: i32) -> (i32, i32) {
    %c0_i32 = arith.constant 0 : i32
    %c0_i32_0 = arith.constant 0 : i32
    %c0_i32_1 = arith.constant 0 : i32
    return %c0_i32, %c0_i32_0 : i32, i32
  }
  func.func @transform_5(%arg0: i32) -> (i32, i32) {
    %c0_i32 = arith.constant 0 : i32
    %c0_i32_0 = arith.constant 0 : i32
    %c0_i32_1 = arith.constant 0 : i32
    return %c0_i32, %c0_i32_0 : i32, i32
  }
  func.func @transform_6(%arg0: i32) -> (i32, i32, i32) {
    %c0_i32 = arith.constant 0 : i32
    %c0_i32_0 = arith.constant 0 : i32
    %c0_i32_1 = arith.constant 0 : i32
    return %arg0, %c0_i32, %c0_i32_0 : i32, i32, i32
  }
}

</mosaic_0001>

<bundles_post_ra>
// kernel: tpu_custom_call.1
= control target key start
LH: loop header
LB: loop body
LE: loop exit
PB: predicated region body
PF: predicated region fallthrough
CT: control target
= control target key end

     0   :  { %6 = vsyncpa [#allocation3], 0  ;;  %s114_s0 = inlined_call_operand.hbm [shape: f32[8,128], index: 0, kind: input, shape index: {}]   ;;  %s115_s1 = inlined_call_operand.hbm [shape: f32[8,128], index: 1, kind: output, shape index: {}]  }
   0x1   :  { %7 = vsyncpa [#allocation4], 0  ;;  %s13_s8 = sshll.u32 %s114_s0, 4  ;;  %s96_s9 = smov [#allocation2]   ;;  %s14_s8 = int_to_ptr.hbm [resolvable:$true] %s13_s8 }
   0x2   :  { %s15_s10 = sshll.u32 %s96_s9, 4  ;;  %s16_s10 = int_to_ptr.vmem [resolvable:$true] %s15_s10 }
   0x3   :  { %18 = dma.hbm_to_vmem [thread:$0]  %s14_s8, 128, %s16_s10, [#allocation3]  }
   0x4   :  { %92 = dma.done.wait [#allocation3], 128  }
   0x5   :  { %93 = vsyncadd [#allocation3], 4294967168  ;;  %s97_s11 = smov [#allocation5]   ;;  %s32_s15 = sshll.u32 %s115_s1, 4  ;;  %v23_v0 = vld [vmem:[#allocation2] sm:$0xff]  ;;  %s33_s15 = int_to_ptr.hbm [resolvable:$true] %s32_s15 }
   0x6   :  { %s30_s12 = sshll.u32 %s97_s11, 4  ;;  %24 = vst [vmem:[#allocation5] sm:$0xff] %v23_v0  ;;  %s31_s12 = int_to_ptr.vmem [resolvable:$true] %s30_s12 }
   0x7   :  { %35 = dma.vmem_to_hbm [thread:$0]  %s31_s12, 128, %s33_s15, [#allocation4]  }
   0x8   :  { %94 = dma.done.wait [#allocation4], 128  }
   0x9   :  { %95 = vsyncadd [#allocation4], 4294967168 }
   0xa   :  { %40 = vsyncpa [#allocation3], 1 }
   0xb   :  { %41 = vsyncpa [#allocation4], 1 }

// kernel: d_block_forward.1
= control target key start
LH: loop header
LB: loop body
LE: loop exit
PB: predicated region body
PF: predicated region fallthrough
CT: control target
= control target key end

     0   :  { %s1186_s21 = smov 0   ;;  %s1360_s0 = inlined_call_operand.vmem [shape: bf16[2,4,468], index: 0, kind: input, shape index: {}]   ;;  %s1361_s1 = inlined_call_operand.vmem [shape: bf16[8,36], index: 1, kind: input, shape index: {}]   ;;  %s1362_s2 = inlined_call_operand.vmem [shape: f32[8,1], index: 2, kind: input, shape index: {}]   ;;  %s1363_s3 = inlined_call_operand.vmem [shape: bf16[8,72], index: 3, kind: input, shape index: {}]   ;;  %s1364_s4 = inlined_call_operand.vmem [shape: f32[8,1], index: 4, kind: input, shape index: {}]   ;;  %s1365_s5 = inlined_call_operand.vmem [shape: f32[1,426], index: 5, kind: input, shape index: {}]   ;;  %s1366_s6 = inlined_call_operand.vmem [shape: f32[2,8,384], index: 6, kind: output, shape index: {}]  }
   0x1 LB: > { %s996_s22 = sadd.s32 4294967295, %s1140_s21   ;;  %p1000_p0 = scmp.ge.s32.totalorder %s1140_s21, 1  ;;  %s1140_s21 = sphi %s1186_s21, %s16_s21  }
   0x2   : > { %p212_p1 = scmp.lt.s32.totalorder %s1140_s21, 3 }
   0x4   : > { %p213_p2 = pnand %p1000_p0, %p212_p1 }
   0x5   : > { %p242_p3 = scmp.lt.s32.totalorder (!%p213_p2), %s996_s22, 1  ;;  %s1142_s27 = smov (!%p213_p2), 127  }
   0x6   : > { %216 = sbr.rel (%p213_p2) target bundleno = 956 (0x3bc), region = 44  ;;  %s1143_s28 = smov (!%p213_p2), 107  }
   0x7   : > { %s1144_s29 = smov (!%p213_p2), 106   ;;  %s1145_s30 = smov (!%p213_p2), 88  }
   0x8   : > { %s1146_s7 = smov (!%p213_p2), 87   ;;  %s1147_s8 = smov (!%p213_p2), 126  }
   0x9   : > { %s1148_s9 = smov (!%p213_p2), 86   ;;  %s1149_s10 = smov (!%p213_p2), 108  }
   0xb   : > { %s1372_s22 = smov (!%p242_p3, %s996_s22), 1  ;;  %vm287_vm0 = vcmask 1043458   ;;  %vm288_vm1 = vcmask 343046   ;;  %vm281_vm2 = vcmask 1039360   ;;  %vm261_vm4 = vcmask 1041408  }
   0xc   : > { %s1093_s23 = sshll.u32 %s1372_s22, 3  ;;  %vm1216_vm3 = vmor %vm288_vm1, %vm287_vm0  ;;  %vm262_vm5 = vcmask 340996   ;;  %vm279_vm7 = vcmask 1043456   ;;  %vm370_vm8 = vcmask 867328   ;;  %vm348_vm9 = vcmask 875520  }
   0xd   : > { %s246_s26 = scalar_lea.vmem %s1360_s0, %s1093_s23  ;;  %vm1224_vm6 = vmor %vm262_vm5, %vm261_vm4  ;;  %vm391_vm10 = vcmask 719872   ;;  %vm413_vm11 = vcmask 711680   ;;  %vm305_vm12 = vcmask 1031168   ;;  %vm434_vm13 = vcmask 703488   ;;  %s1114_s23 = smul.u32 24, %s1372_s22 }
   0xe   : > { %v253_v0 = vld [vmem:[%s246_s26] sm:$0xff]  ;;  %vm327_vm14 = vcmask 883712   ;;  %vm508_vm15 = vcmask 293888   ;;  %vm602_vm0 = vcmask 343044  }
   0xf   : > { %255 = vst [vmem:[#allocation1] ss:$2 sm:$0xff] %v253_v0  ;;  %vm603_vm1 = vmor %vm602_vm0, %vm279_vm7  ;;  %s251_s26 = scalar_lea.vmem %s1366_s6, %s1114_s23 }
  0x16   : > { %v256_v1 = vld.sshfl [vmem:[#allocation1] sm:$0xff pattern:$0x75643120]  ;;  %v257_v2 = vld.sshfl [vmem:[#allocation1 + $0x8] sm:$0xff pattern:$0x75643120] }
  0x17   : > { %268 = vst [vmem:[#allocation1 + $0x1] ss:$2 sm:$0xff] %v253_v0 }
  0x18   : > { %260 = vst [vmem:[#allocation2] sm:$0x33] %v256_v1 }
  0x19   : > { %264 = vst.msk [vmem:[#allocation2 + $0x8] sm:$0x33] %vm1224_vm6, %v257_v2 }
  0x1e   : > { %v269_v3 = vld.sshfl [vmem:[#allocation1] sm:$0xff pattern:$0x75643120]  ;;  %v271_v4 = vld.sshfl [vmem:[#allocation1 + $0x8] sm:$0xff pattern:$0x75643120] }
  0x1f   : > { %273 = vrot.lane.b32.xlu1 %v269_v3, %s1142_s27  ;;  %293 = vst [vmem:[#allocation1] ss:$2 sm:$0xff] %v253_v0  ;;  %275 = vrot.lane.b32.xlu2 %v271_v4, %s1142_s27  ;;  %v1150_v4 = vmov 0  }
  0x20   : > { %1132 = vset.pattern.permute.xlu1 %v1150_v4  ;;  %1133 = vset.pattern.permute.xlu0 %v1150_v4 }
  0x26   : > { %v294_v5 = vld.sshfl [vmem:[#allocation1] sm:$0xff pattern:$0x75643120]  ;;  %v296_v6 = vld.sshfl [vmem:[#allocation1 + $0x8] sm:$0xff pattern:$0x75643120] }
  0x27   : > { %315 = vst [vmem:[#allocation1 + $0x1] ss:$2 sm:$0xff] %v253_v0 }
  0x2e   : > { %v316_v7 = vld.sshfl [vmem:[#allocation1] sm:$0xff pattern:$0x75643120]  ;;  %v318_v8 = vld.sshfl [vmem:[#allocation1 + $0x8] sm:$0xff pattern:$0x75643120] }
  0x2f   : > { %336 = vst [vmem:[#allocation1] ss:$2 sm:$0xff] %v253_v0 }
  0x36   : > { %v337_v9 = vld.sshfl [vmem:[#allocation1] sm:$0xff pattern:$0x75643120]  ;;  %v339_v10 = vld.sshfl [vmem:[#allocation1 + $0x8] sm:$0xff pattern:$0x75643120] }
  0x37   : > { %341 = vrot.lane.b32.xlu1 %v337_v9, %s1143_s28  ;;  %358 = vst [vmem:[#allocation1 + $0x1] ss:$2 sm:$0xff] %v253_v0 }
  0x3e   : > { %v359_v11 = vld.sshfl [vmem:[#allocation1] sm:$0xff pattern:$0x75643120]  ;;  %v361_v12 = vld.sshfl [vmem:[#allocation1 + $0x8] sm:$0xff pattern:$0x75643120] }
  0x3f   : > { %343 = vrot.lane.b32.xlu1 %v339_v10, %s1143_s28  ;;  %379 = vst [vmem:[#allocation1] ss:$2 sm:$0xff] %v253_v0  ;;  %363 = vrot.lane.b32.xlu2 %v359_v11, %s1144_s29 }
  0x46   : > { %v382_v13 = vld.sshfl [vmem:[#allocation1 + $0x8] sm:$0xff pattern:$0x75643120]  ;;  %v380_v14 = vld.sshfl [vmem:[#allocation1] sm:$0xff pattern:$0x75643120] }
  0x47   : > { %386 = vrot.lane.b32.xlu1 %v382_v13, %s1145_s30  ;;  %384 = vrot.lane.b32.xlu0 %v380_v14, %s1145_s30  ;;  %401 = vst [vmem:[#allocation1 + $0x1] ss:$2 sm:$0xff] %v253_v0 }
  0x48   : > { %365 = vrot.lane.b32.xlu2 %v361_v12, %s1144_s29 }
  0x4e   : > { %v404_v15 = vld.sshfl [vmem:[#allocation1 + $0x8] sm:$0xff pattern:$0x75643120]  ;;  %v402_v16 = vld.sshfl [vmem:[#allocation1] sm:$0xff pattern:$0x75643120] }
  0x4f   : > { %408 = vrot.lane.b32.xlu0 %v404_v15, %s1146_s7  ;;  %422 = vst [vmem:[#allocation1] ss:$2 sm:$0xff] %v253_v0  ;;  %300 = vrot.lane.b32.xlu1 %v296_v6, %s1147_s8 }
  0x50   : > { %406 = vrot.lane.b32.xlu2 %v402_v16, %s1146_s7 }
  0x56   : > { %v423_v17 = vld.sshfl [vmem:[#allocation1] sm:$0xff pattern:$0x75643120]  ;;  %v425_v18 = vld.sshfl [vmem:[#allocation1 + $0x8] sm:$0xff pattern:$0x75643120] }
  0x57   : > { %427 = vrot.lane.b32.xlu0 %v423_v17, %s1148_s9 }
  0x58   : > { %320 = vrot.lane.b32.xlu2 %v316_v7, %s1149_s10 }
  0x5f   : > { %429 = vrot.lane.b32.xlu0 %v425_v18, %s1148_s9 }
  0x67   : > { %298 = vrot.lane.b32.xlu0 %v294_v5, %s1147_s8 }
  0x6f   : > { %322 = vrot.lane.b32.xlu0 %v318_v8, %s1149_s10 }
  0x79   : > { %v276_v19 = vpop.permute.xlu2 %275 }
  0x7a   : > { %v278_v21 = vrot.slane %v276_v19, 4 }
  0x7c   : > { %v283_v22 = vsel %vm281_vm2, %v276_v19, %v278_v21 }
  0x7d   : > { %290 = vst.msk [vmem:[#allocation2 + $0x8] sm:$0xcc] %vm1216_vm3, %v283_v22 }
  0x91   : > { %v274_v24 = vpop.permute.xlu1 %273 }
  0x92   : > { %v277_v25 = vrot.slane %v274_v24, 4 }
  0x94   : > { %v280_v26 = vsel %vm279_vm7, %v277_v25, %v278_v21 }
  0x95   : > { %v282_v27 = vsel %vm281_vm2, %v274_v24, %v280_v26 }
  0x96   : > { %286 = vst [vmem:[#allocation2] sm:$0xcc] %v282_v27 }
  0x99   : > { %v364_v28 = vpop.permute.xlu2 %363 }
  0x9a   : > { %v367_v29 = vrot.slane %v364_v28, 4 }
  0xa2   : > { %v366_v30 = vpop.permute.xlu2 %365 }
  0xa3   : > { %v368_v31 = vrot.slane %v366_v30, 4 }
  0xa5   : > { %v369_v32 = vsel %vm279_vm7, %v367_v29, %v368_v31  ;;  %v372_v33 = vsel %vm370_vm8, %v366_v30, %v368_v31  ;;  %v452_v29 = vld [vmem:[%s1362_s2] sm:$0xff] }
  0xa6   : > { %v371_v34 = vsel %vm370_vm8, %v364_v28, %v369_v32  ;;  %376 = vst.msk [vmem:[#allocation2 + $0x28] sm:$0xcc] %vm1216_vm3, %v372_v33  ;;  %455 = vperm.xlu1 %1132, %v452_v29  }
  0xa7   : > { %375 = vst [vmem:[#allocation2 + $0x20] sm:$0xcc] %v371_v34 }
  0xa9   : > { %v342_v35 = vpop.permute.xlu1 %341 }
  0xaa   : > { %v345_v36 = vrot.slane %v342_v35, 4  ;;  %v407_v49 = vpop.permute.xlu2 %406 }
  0xab   : > { %v410_v50 = vrot.slane %v407_v49, 4 }
  0xb1   : > { %v344_v37 = vpop.permute.xlu1 %343 }
  0xb2   : > { %v346_v38 = vrot.slane %v344_v37, 4  ;;  %v321_v8 = vpop.permute.xlu2 %320 }
  0xb3   : > { %v324_v15 = vrot.slane %v321_v8, 4 }
  0xb4   : > { %v347_v39 = vsel %vm279_vm7, %v345_v36, %v346_v38  ;;  %v350_v40 = vsel %vm348_vm9, %v344_v37, %v346_v38  ;;  %v1014_v37 = vld [vmem:[#allocation2 + $0x8] sm:$0xf] }
  0xb5   : > { %v349_v41 = vsel %vm348_vm9, %v342_v35, %v347_v39  ;;  %354 = vst.msk [vmem:[#allocation2 + $0x28] sm:$0x33] %vm1224_vm6, %v350_v40  ;;  %v1006_v39 = vld [vmem:[#allocation2] sm:$0xf] }
  0xb6   : > { %353 = vst [vmem:[#allocation2 + $0x20] sm:$0x33] %v349_v41 }
  0xb9   : > { %v387_v42 = vpop.permute.xlu1 %386  ;;  %v385_v43 = vpop.permute.xlu0 %384 }
  0xba   : > { %v389_v44 = vrot.slane %v387_v42, 4  ;;  %v388_v45 = vrot.slane %v385_v43, 4 }
  0xbc   : > { %v393_v46 = vsel %vm391_vm10, %v387_v42, %v389_v44  ;;  %v390_v47 = vsel %vm279_vm7, %v388_v45, %v389_v44  ;;  %v1030_v14 = vld [vmem:[#allocation2 + $0x28] sm:$0xf]  ;;  %v1099_v20 = vld [vmem:[#allocation2 + $0x2c] sm:$0xf] }
  0xbd   : > { %397 = vst.msk [vmem:[#allocation2 + $0x38] sm:$0x33] %vm1224_vm6, %v393_v46  ;;  %v392_v48 = vsel %vm391_vm10, %v385_v43, %v390_v47  ;;  %v1022_v18 = vld [vmem:[#allocation2 + $0x20] sm:$0xf]  ;;  %v1098_v19 = vld [vmem:[#allocation2 + $0x24] sm:$0xf] }
  0xbe   : > { %396 = vst [vmem:[#allocation2 + $0x30] sm:$0x33] %v392_v48  ;;  %v1094_v43 = vld [vmem:[#allocation2 + $0x4] sm:$0xf]  ;;  %v441_v48 = vld [vmem:[%s1361_s1] sm:$0xf] }
  0xc1   : > { %v409_v51 = vpop.permute.xlu0 %408  ;;  %v301_v52 = vpop.permute.xlu1 %300 }
  0xc2   : > { %v411_v53 = vrot.slane %v409_v51, 4  ;;  %v303_v54 = vrot.slane %v301_v52, 4 }
  0xc4   : > { %v415_v55 = vsel %vm413_vm11, %v409_v51, %v411_v53  ;;  %v412_v56 = vsel %vm279_vm7, %v410_v50, %v411_v53  ;;  %v307_v57 = vsel %vm305_vm12, %v301_v52, %v303_v54  ;;  %v1095_v52 = vld [vmem:[#allocation2 + $0xc] sm:$0xf] }
  0xc5   : > { %419 = vst.msk [vmem:[#allocation2 + $0x38] sm:$0xcc] %vm1216_vm3, %v415_v55  ;;  %v414_v58 = vsel %vm413_vm11, %v407_v49, %v412_v56 }
  0xc6   : > { %418 = vst [vmem:[#allocation2 + $0x30] sm:$0xcc] %v414_v58  ;;  %v584_v58 = vld [vmem:[%s1365_s5] sm:$0xf] }
  0xc7   : > { %311 = vst.msk [vmem:[#allocation2 + $0x18] sm:$0x33] %vm1224_vm6, %v307_v57 }
  0xc9   : > { %v428_v59 = vpop.permute.xlu0 %427 }
  0xca   : > { %v431_v61 = vrot.slane %v428_v59, 4 }
  0xcc   : > { %v1101_v23 = vld [vmem:[#allocation2 + $0x34] sm:$0xf0]  ;;  %v1032_v49 = vld [vmem:[#allocation2 + $0x38] sm:$0xf0] }
  0xcd   : > { %v1100_v24 = vld [vmem:[#allocation2 + $0x2c] sm:$0xf0]  ;;  %v1024_v28 = vld [vmem:[#allocation2 + $0x30] sm:$0xf0]  ;;  %v1031_v32 = vor.u32 %v1101_v23, %v1030_v14  ;;  %v1035_v50 = vor.u32 %v1099_v20, %v1032_v49  ;;  %v588_v14 = vperm.slane %v584_v58, 2 }
  0xce   : > { %v1023_v34 = vor.u32 %v1100_v24, %v1022_v18  ;;  %v1027_v35 = vor.u32 %v1098_v19, %v1024_v28 }
  0xd1   : > { %v430_v60 = vpop.permute.xlu0 %429 }
  0xd2   : > { %v432_v62 = vrot.slane %v430_v60, 4 }
  0xd4   : > { %v433_v63 = vsel %vm279_vm7, %v431_v61, %v432_v62  ;;  %v436_v0 = vsel %vm434_vm13, %v430_v60, %v432_v62 }
  0xd5   : > { %v435_v1 = vsel %vm434_vm13, %v428_v59, %v433_v63  ;;  %440 = vst.msk [vmem:[#allocation2 + $0x48] sm:$0x33] %vm1224_vm6, %v436_v0  ;;  %v587_v63 = vperm.slane %v584_v58, 1 }
  0xd6   : > { %439 = vst [vmem:[#allocation2 + $0x40] sm:$0x33] %v435_v1 }
  0xd9   : > { %v299_v2 = vpop.permute.xlu0 %298 }
  0xda   : > { %v302_v3 = vrot.slane %v299_v2, 4 }
  0xdc   : > { %v304_v5 = vsel %vm279_vm7, %v302_v3, %v303_v54  ;;  %v451_v6 = vld [vmem:[#allocation2 + $0x48] sm:$0x33] }
  0xdd   : > { %v306_v7 = vsel %vm305_vm12, %v299_v2, %v304_v5  ;;  %v486_v9 = vunpack.c.l.b16 %v451_v6  ;;  %v450_v10 = vld [vmem:[#allocation2 + $0x40] sm:$0x33]  ;;  %v487_v36 = vunpack.c.h.b16 %v451_v6  ;;  %v586_v2 = vperm.slane %v584_v58, 0 }
  0xde   : > { %310 = vst [vmem:[#allocation2 + $0x10] sm:$0x33] %v306_v7  ;;  %v484_v11 = vunpack.c.l.b16 %v450_v10  ;;  %v485_v12 = vunpack.c.h.b16 %v450_v10 }
  0xdf   : > { %v498_v13 = vpack.c.b16 %v486_v9, %v486_v9  ;;  %v499_v40 = vpack.c.b16 %v487_v36, %v487_v36 }
  0xe0   : > { %v496_v16 = vpack.c.b16 %v484_v11, %v484_v11  ;;  %v497_v17 = vpack.c.b16 %v485_v12, %v485_v12 }
  0xe1   : > { %v323_v21 = vpop.permute.xlu0 %322  ;;  %v519_v22 = vsel %vm261_vm4, %v498_v13, 0  ;;  %v522_v47 = vsel %vm261_vm4, %v499_v40, 0 }
  0xe2   : > { %v325_v25 = vrot.slane %v323_v21, 4  ;;  %555 = vmatpush.bf16.msra.mxu2 %v519_v22  ;;  %v513_v26 = vsel %vm261_vm4, %v496_v16, 0  ;;  %v516_v27 = vsel %vm261_vm4, %v497_v17, 0  ;;  %v589_v16 = vperm.slane %v584_v58, 3 }
  0xe3   : > { %529 = vmatpush.bf16.msra.mxu3 %v513_v26  ;;  %542 = vmatpush.bf16.msra.mxu1 %v516_v27 }
  0xe4   : > { %v326_v30 = vsel %vm279_vm7, %v324_v15, %v325_v25  ;;  %v329_v31 = vsel %vm327_vm14, %v323_v21, %v325_v25 }
  0xe5   : > { %v328_v33 = vsel %vm327_vm14, %v321_v8, %v326_v30  ;;  %333 = vst.msk [vmem:[#allocation2 + $0x18] sm:$0xcc] %vm1216_vm3, %v329_v31  ;;  %vm842_vm3 = vcmask 588800  }
  0xe6   : > { %332 = vst [vmem:[#allocation2 + $0x10] sm:$0xcc] %v328_v33  ;;  %556 = vmatpush.bf16.msra.mxu2 %v1031_v32 }
  0xe7   : > { %530 = vmatpush.bf16.msra.mxu3 %v1023_v34  ;;  %543 = vmatpush.bf16.msra.mxu1 %v1027_v35 }
  0xec   : > { %v1097_v38 = vld [vmem:[#allocation2 + $0x14] sm:$0xf0]  ;;  %v1016_v51 = vld [vmem:[#allocation2 + $0x18] sm:$0xf0] }
  0xed   : > { %v1015_v41 = vor.u32 %v1097_v38, %v1014_v37  ;;  %v1096_v42 = vld [vmem:[#allocation2 + $0xc] sm:$0xf0]  ;;  %v1008_v44 = vld [vmem:[#allocation2 + $0x10] sm:$0xf0]  ;;  %v1019_v53 = vor.u32 %v1095_v52, %v1016_v51 }
  0xee   : > { %v1007_v45 = vor.u32 %v1096_v42, %v1006_v39  ;;  %v1011_v46 = vor.u32 %v1094_v43, %v1008_v44 }
  0xef   : > { %557 = vmatpush.bf16.msra.mxu2 %v1015_v41 }
  0xf0   : > { %531 = vmatpush.bf16.msra.mxu3 %v1007_v45  ;;  %544 = vmatpush.bf16.msra.mxu1 %v1011_v46 }
  0xf2   : > { %1038 = vmatmul.msk.bf16.vlgmr.msra.gmra.mxu2 %vm508_vm15, %v441_v48 }
  0xf3   : > { %1036 = vmatmul.msk.bf16.vlgmr.msra.gmra.mxu3 %vm508_vm15, %v441_v48  ;;  %1037 = vmatmul.msk.bf16.vlgmr.msra.gmra.mxu1 %vm508_vm15, %v441_v48 }
  0xf4   : > { %568 = vmatpush.bf16.msrb.mxu3 %v522_v47 }
  0xf8   : > { %569 = vmatpush.bf16.msrb.mxu3 %v1035_v50 }
  0xfc   : > { %570 = vmatpush.bf16.msrb.mxu3 %v1019_v53 }
 0x103   : > { %1039 = vmatmul.msk.bf16.vlgmr.msrb.gmra.mxu3 %vm508_vm15, %v441_v48 }
 0x118   : > { %v456_v54 = vpop.permute.xlu1 %455 }
 0x170   : > { %v546_v55 = vpop.f32.mrf.mxu1 }
 0x171   : > { %v547_v56 = vadd.f32 %v546_v55, %v456_v54 }
 0x173   : > { %v577_v57 = vmul.f32 0.2, %v547_v56 }
 0x175   : > { %v559_v59 = vpop.f32.mrf.mxu2  ;;  %v581_v62 = vmax.f32 %v547_v56, %v577_v57 }
 0x176   : > { %v533_v60 = vpop.f32.mrf.mxu3  ;;  %v560_v9 = vadd.f32 %v559_v59, %v456_v54 }
 0x177   : > { %v534_v61 = vadd.f32 %v533_v60, %v456_v54  ;;  %v595_v4 = vmul.f32 %v587_v63, %v581_v62 }
 0x178   : > { %v548_v0 = vpop.f32.mrf.mxu1  ;;  %v578_v10 = vmul.f32 0.2, %v560_v9 }
 0x179   : > { %v576_v1 = vmul.f32 0.2, %v534_v61 }
 0x17a   : > { %v582_v13 = vmax.f32 %v560_v9, %v578_v10 }
 0x17b   : > { %v580_v3 = vmax.f32 %v534_v61, %v576_v1 }
 0x17c   : > { %v596_v18 = vmul.f32 %v588_v14, %v582_v13 }
 0x17d   : > { %v594_v5 = vmul.f32 %v586_v2, %v580_v3  ;;  %v561_v6 = vpop.f32.mrf.mxu2 }
 0x17e   : > { %v535_v7 = vpop.f32.mrf.mxu3 }
 0x17f   : > { %v598_v8 = vpack.c.bf16 %v595_v4, %v594_v5 }
 0x181   : > { %732 = vrot.lane.b32.xlu0 %v598_v8, %s1148_s9  ;;  %698 = vrot.lane.b32.xlu2 %v598_v8, %s1145_s30  ;;  %607 = vst [vmem:[#allocation4] sm:$0xff] %v598_v8 }
 0x186   : > { %v572_v11 = vpop.f32.mrf.mxu3 }
 0x187   : > { %v573_v12 = vadd.f32 %v572_v11, %v456_v54 }
 0x189   : > { %v579_v15 = vmul.f32 0.2, %v573_v12  ;;  %715 = vrot.lane.b32.xlu0 %v598_v8, %s1146_s7 }
 0x18b   : > { %v583_v17 = vmax.f32 %v573_v12, %v579_v15 }
 0x18d   : > { %v597_v19 = vmul.f32 %v589_v16, %v583_v17 }
 0x18e   : > { %v574_v21 = vpop.f32.mrf.mxu3 }
 0x18f   : > { %v599_v22 = vpack.c.bf16 %v597_v19, %v596_v18 }
 0x191   : > { %604 = vst.msk [vmem:[#allocation3 + $0x8] sm:$0xff] %vm603_vm1, %v599_v22 }
 0x198   : > { %v695_v23 = vld [vmem:[#allocation3 + $0x8] sm:$0xff] }
 0x199   : > { %v606_v24 = vld [vmem:[#allocation3 + $0x8] sm:$0xf]  ;;  %700 = vrot.lane.b32.xlu1 %v695_v23, %s1145_s30  ;;  %666 = vrot.lane.b32.xlu0 %v695_v23, %s1143_s28 }
 0x19a   : > { %608 = vst [vmem:[#allocation4 + $0x8] sm:$0xf] %v606_v24  ;;  %734 = vrot.lane.b32.xlu2 %v695_v23, %s1148_s9 }
 0x1a1   : > { %681 = vrot.lane.b32.xlu1 %v598_v8, %s1144_s29  ;;  %664 = vrot.lane.b32.xlu0 %v598_v8, %s1143_s28 }
 0x1a2   : > { %717 = vrot.lane.b32.xlu2 %v695_v23, %s1146_s7 }
 0x1a9   : > { %683 = vrot.lane.b32.xlu1 %v695_v23, %s1144_s29  ;;  %630 = vrot.lane.b32.xlu0 %v598_v8, %s1147_s8 }
 0x1aa   : > { %649 = vrot.lane.b32.xlu2 %v695_v23, %s1149_s10 }
 0x1b1   : > { %632 = vrot.lane.b32.xlu1 %v695_v23, %s1147_s8 }
 0x1b2   : > { %615 = vrot.lane.b32.xlu2 %v695_v23, %s1142_s27 }
 0x1b9   : > { %647 = vrot.lane.b32.xlu1 %v598_v8, %s1149_s10 }
 0x1ba   : > { %613 = vrot.lane.b32.xlu2 %v598_v8, %s1142_s27 }
 0x1db   : > { %v699_v25 = vpop.permute.xlu2 %698 }
 0x1dc   : > { %v702_v54 = vrot.slane %v699_v25, 4 }
 0x1f3   : > { %v733_v26 = vpop.permute.xlu0 %732 }
 0x1f4   : > { %v735_v27 = vpop.permute.xlu2 %734  ;;  %v736_v28 = vrot.slane %v733_v26, 4 }
 0x1f5   : > { %v737_v29 = vrot.slane %v735_v27, 4 }
 0x1f7   : > { %v740_v30 = vsel %vm434_vm13, %v735_v27, %v737_v29  ;;  %v738_v31 = vsel %vm279_vm7, %v736_v28, %v737_v29 }
 0x1f8   : > { %744 = vst [vmem:[#allocation4 + $0x68] sm:$0xf] %v740_v30  ;;  %v739_v32 = vsel %vm434_vm13, %v733_v26, %v738_v31  ;;  %v764_v26 = vld [vmem:[%s1364_s4] sm:$0xff] }
 0x1f9   : > { %v812_v33 = vunpack.c.l.b16 %v739_v32  ;;  %v813_v34 = vunpack.c.h.b16 %v739_v32  ;;  %767 = vperm.xlu0 %1133, %v764_v26  }
 0x1fb   : > { %v716_v35 = vpop.permute.xlu0 %715  ;;  %v827_v36 = vpack.c.b16 %v812_v33, %v812_v33  ;;  %v828_v37 = vpack.c.b16 %v813_v34, %v813_v34 }
 0x1fc   : > { %v718_v38 = vpop.permute.xlu2 %717  ;;  %v719_v39 = vrot.slane %v716_v35, 4 }
 0x1fd   : > { %v720_v40 = vrot.slane %v718_v38, 4  ;;  %v847_v41 = vsel %vm279_vm7, %v827_v36, 0  ;;  %v850_v42 = vsel %vm279_vm7, %v828_v37, 0 }
 0x1fe   : > { %858 = vmatpush.bf16.msra.mxu0 %v847_v41  ;;  %871 = vmatpush.bf16.msrb.mxu1 %v850_v42 }
 0x1ff   : > { %v723_v43 = vsel %vm413_vm11, %v718_v38, %v720_v40  ;;  %v721_v44 = vsel %vm279_vm7, %v719_v39, %v720_v40  ;;  %v763_v45 = vld [vmem:[#allocation4 + $0x68] sm:$0xf] }
 0x200   : > { %727 = vst [vmem:[#allocation4 + $0x5c] sm:$0xf] %v723_v43  ;;  %v722_v46 = vsel %vm413_vm11, %v716_v35, %v721_v44  ;;  %v814_v20 = vunpack.c.l.b16 %v763_v45 }
 0x201   : > { %726 = vst [vmem:[#allocation4 + $0x54] sm:$0xff] %v722_v46 }
 0x202   : > { %v829_v47 = vpack.c.b16 %v814_v20, %v814_v20 }
 0x204   : > { %v1305_v48 = vpop.permute.xlu2 %649  ;;  %v853_v49 = vsel %vm279_vm7, %v829_v47, 0 }
 0x205   : > { %v652_v50 = vrot.slane %v1305_v48, 4  ;;  %884 = vmatpush.bf16.msrb.mxu2 %v853_v49 }
 0x207   : > { %v655_v51 = vsel %vm327_vm14, %v1305_v48, %v652_v50  ;;  %v1113_v7 = vld [vmem:[#allocation4 + $0x58] sm:$0xf0] }
 0x208   : > { %659 = vst [vmem:[#allocation4 + $0x2c] sm:$0xf] %v655_v51  ;;  %v1112_v8 = vld [vmem:[#allocation4 + $0x50] sm:$0xf0]  ;;  %v1080_v14 = vld [vmem:[#allocation4 + $0x54] sm:$0xf0] }
 0x209   : > { %v1050_v51 = vld [vmem:[#allocation4 + $0x8] sm:$0xf] }
 0x20b   : > { %v701_v52 = vpop.permute.xlu1 %700  ;;  %v667_v53 = vpop.permute.xlu0 %666 }
 0x20c   : > { %v703_v55 = vrot.slane %v701_v52, 4  ;;  %v669_v56 = vrot.slane %v667_v53, 4  ;;  %v616_v57 = vpop.permute.xlu2 %615 }
 0x20d   : > { %v618_v58 = vrot.slane %v616_v57, 4 }
 0x20e   : > { %v704_v59 = vsel %vm279_vm7, %v702_v54, %v703_v55  ;;  %v706_v60 = vsel %vm391_vm10, %v701_v52, %v703_v55  ;;  %v672_v61 = vsel %vm348_vm9, %v667_v53, %v669_v56  ;;  %v745_v53 = vld [vmem:[%s1363_s3] sm:$0xf] }
 0x20f   : > { %v705_v62 = vsel %vm391_vm10, %v699_v25, %v704_v59  ;;  %710 = vst [vmem:[#allocation4 + $0x50] sm:$0xf] %v706_v60  ;;  %v621_v63 = vsel %vm281_vm2, %v616_v57, %v618_v58  ;;  %v1107_v46 = vld [vmem:[#allocation4 + $0x28] sm:$0xf0]  ;;  %v1042_v60 = vld [vmem:[#allocation4] sm:$0xf] }
 0x210   : > { %709 = vst [vmem:[#allocation4 + $0x48] sm:$0xff] %v705_v62 }
 0x211   : > { %676 = vst [vmem:[#allocation4 + $0x38] sm:$0xf] %v672_v61  ;;  %v1102_v61 = vld [vmem:[#allocation4 + $0x4] sm:$0xf] }
 0x212   : > { %625 = vst [vmem:[#allocation4 + $0x14] sm:$0xf] %v621_v63 }
 0x213   : > { %v682_v0 = vpop.permute.xlu1 %681  ;;  %v665_v1 = vpop.permute.xlu0 %664 }
 0x214   : > { %v668_v2 = vrot.slane %v665_v1, 4  ;;  %v614_v3 = vpop.permute.xlu2 %613  ;;  %v685_v19 = vrot.slane %v682_v0, 4 }
 0x215   : > { %v617_v4 = vrot.slane %v614_v3, 4 }
 0x216   : > { %v670_v5 = vsel %vm279_vm7, %v668_v2, %v669_v56  ;;  %v1086_v6 = vld [vmem:[#allocation4 + $0x50] sm:$0xf] }
 0x217   : > { %v671_v9 = vsel %vm348_vm9, %v665_v1, %v670_v5  ;;  %v619_v10 = vsel %vm279_vm7, %v617_v4, %v618_v58  ;;  %v1087_v11 = vor.u32 %v1113_v7, %v1086_v6  ;;  %v1078_v12 = vld [vmem:[#allocation4 + $0x48] sm:$0xf]  ;;  %v1111_v13 = vld [vmem:[#allocation4 + $0x4c] sm:$0xf] }
 0x218   : > { %675 = vst [vmem:[#allocation4 + $0x30] sm:$0xff] %v671_v9  ;;  %v620_v15 = vsel %vm281_vm2, %v614_v3, %v619_v10  ;;  %v1079_v16 = vor.u32 %v1112_v8, %v1078_v12  ;;  %v1083_v17 = vor.u32 %v1111_v13, %v1080_v14  ;;  %v1074_v30 = vld [vmem:[#allocation4 + $0x38] sm:$0xf] }
 0x219   : > { %624 = vst [vmem:[#allocation4 + $0xc] sm:$0xff] %v620_v15  ;;  %885 = vmatpush.bf16.msrb.mxu2 %v1087_v11  ;;  %v1104_v49 = vld [vmem:[#allocation4 + $0x10] sm:$0xf0] }
 0x21a   : > { %859 = vmatpush.bf16.msra.mxu0 %v1079_v16  ;;  %872 = vmatpush.bf16.msrb.mxu1 %v1083_v17  ;;  %v1051_v52 = vor.u32 %v1104_v49, %v1050_v51 }
 0x21b   : > { %v684_v18 = vpop.permute.xlu1 %683  ;;  %v631_v25 = vpop.permute.xlu0 %630 }
 0x21c   : > { %v686_v21 = vrot.slane %v684_v18, 4  ;;  %v634_v28 = vrot.slane %v631_v25, 4 }
 0x21e   : > { %v687_v22 = vsel %vm279_vm7, %v685_v19, %v686_v21  ;;  %v689_v23 = vsel %vm370_vm8, %v684_v18, %v686_v21 }
 0x21f   : > { %v688_v24 = vsel %vm370_vm8, %v682_v0, %v687_v22  ;;  %693 = vst [vmem:[#allocation4 + $0x44] sm:$0xf] %v689_v23  ;;  %v1066_v34 = vld [vmem:[#allocation4 + $0x30] sm:$0xf]  ;;  %v1108_v35 = vld [vmem:[#allocation4 + $0x34] sm:$0xf] }
 0x220   : > { %692 = vst [vmem:[#allocation4 + $0x3c] sm:$0xff] %v688_v24  ;;  %v1103_v58 = vld [vmem:[#allocation4 + $0x8] sm:$0xf0]  ;;  %v1044_v59 = vld [vmem:[#allocation4 + $0xc] sm:$0xf0] }
 0x221   : > { %v1043_v62 = vor.u32 %v1103_v58, %v1042_v60  ;;  %v1047_v63 = vor.u32 %v1102_v61, %v1044_v59 }
 0x223   : > { %v633_v27 = vpop.permute.xlu1 %632 }
 0x224   : > { %v635_v29 = vrot.slane %v633_v27, 4 }
 0x226   : > { %v636_v31 = vsel %vm279_vm7, %v634_v28, %v635_v29  ;;  %v638_v32 = vsel %vm305_vm12, %v633_v27, %v635_v29  ;;  %v1110_v33 = vld [vmem:[#allocation4 + $0x40] sm:$0xf0] }
 0x227   : > { %v637_v36 = vsel %vm305_vm12, %v631_v25, %v636_v31  ;;  %642 = vst [vmem:[#allocation4 + $0x20] sm:$0xf] %v638_v32  ;;  %v1075_v37 = vor.u32 %v1110_v33, %v1074_v30  ;;  %v1109_v38 = vld [vmem:[#allocation4 + $0x38] sm:$0xf0]  ;;  %v1068_v39 = vld [vmem:[#allocation4 + $0x3c] sm:$0xf0] }
 0x228   : > { %641 = vst [vmem:[#allocation4 + $0x18] sm:$0xff] %v637_v36  ;;  %v1067_v40 = vor.u32 %v1109_v38, %v1066_v34  ;;  %v1071_v41 = vor.u32 %v1108_v35, %v1068_v39 }
 0x229   : > { %886 = vmatpush.bf16.msrb.mxu2 %v1075_v37 }
 0x22a   : > { %860 = vmatpush.bf16.msra.mxu0 %v1067_v40  ;;  %873 = vmatpush.bf16.msrb.mxu1 %v1071_v41 }
 0x22b   : > { %v648_v42 = vpop.permute.xlu1 %647 }
 0x22c   : > { %v651_v43 = vrot.slane %v648_v42, 4 }
 0x22e   : > { %v653_v44 = vsel %vm279_vm7, %v651_v43, %v652_v50  ;;  %v1062_v45 = vld [vmem:[#allocation4 + $0x20] sm:$0xf] }
 0x22f   : > { %v654_v20 = vsel %vm327_vm14, %v648_v42, %v653_v44  ;;  %v1063_v47 = vor.u32 %v1107_v46, %v1062_v45  ;;  %v1054_v54 = vld [vmem:[#allocation4 + $0x18] sm:$0xf]  ;;  %v1105_v55 = vld [vmem:[#allocation4 + $0x1c] sm:$0xf] }
 0x230   : > { %658 = vst [vmem:[#allocation4 + $0x24] sm:$0xff] %v654_v20 }
 0x231   : > { %887 = vmatpush.bf16.msrb.mxu2 %v1063_v47 }
 0x235   : > { %888 = vmatpush.bf16.msrb.mxu2 %v1051_v52 }
 0x237   : > { %v1106_v48 = vld [vmem:[#allocation4 + $0x20] sm:$0xf0]  ;;  %v1056_v50 = vld [vmem:[#allocation4 + $0x24] sm:$0xf0] }
 0x238   : > { %1090 = vmatmul.msk.bf16.vlgmr.msrb.gmra.mxu2 %vm842_vm3, %v745_v53  ;;  %v1055_v56 = vor.u32 %v1106_v48, %v1054_v54  ;;  %v1059_v57 = vor.u32 %v1105_v55, %v1056_v50 }
 0x23a   : > { %861 = vmatpush.bf16.msra.mxu0 %v1055_v56  ;;  %874 = vmatpush.bf16.msrb.mxu1 %v1059_v57 }
 0x23e   : > { %862 = vmatpush.bf16.msra.mxu0 %v1043_v62  ;;  %875 = vmatpush.bf16.msrb.mxu1 %v1047_v63 }
 0x241   : > { %1088 = vmatmul.msk.bf16.vlgmr.msra.gmra.mxu0 %vm842_vm3, %v745_v53  ;;  %1089 = vmatmul.msk.bf16.vlgmr.msrb.gmra.mxu1 %vm842_vm3, %v745_v53 }
 0x26b   : > { %v768_v1 = vpop.permute.xlu0 %767 }
 0x2bb   : > { %v890_v0 = vpop.f32.mrf.mxu2 }
 0x2bc   : > { %v891_v8 = vadd.f32 %v890_v0, %v768_v1 }
 0x2be   : > { %v864_v2 = vpop.f32.mrf.mxu0  ;;  %v877_v3 = vpop.f32.mrf.mxu1  ;;  %v896_v14 = vmul.f32 0.2, %v891_v8 }
 0x2bf   : > { %v865_v4 = vadd.f32 %v864_v2, %v768_v1  ;;  %v878_v5 = vadd.f32 %v877_v3, %v768_v1 }
 0x2c0   : > { %v899_v15 = vmax.f32 %v891_v8, %v896_v14 }
 0x2c1   : > { %v894_v6 = vmul.f32 0.2, %v865_v4  ;;  %v895_v7 = vmul.f32 0.2, %v878_v5 }
 0x2c3   : > { %v897_v9 = vmax.f32 %v865_v4, %v894_v6  ;;  %v898_v10 = vmax.f32 %v878_v5, %v895_v7  ;;  %v892_v11 = vpop.f32.mrf.mxu2 }
 0x2c5   : > { %903 = vrot.lane.b32.xlu1 %v897_v9, %s1142_s27  ;;  %905 = vrot.lane.b32.xlu2 %v898_v10, %s1142_s27 }
 0x2c6   : > { %v866_v12 = vpop.f32.mrf.mxu0  ;;  %v879_v13 = vpop.f32.mrf.mxu1 }
 0x2cd   : > { %907 = vrot.lane.b32.xlu1 %v899_v15, %s1142_s27 }
 0x31f   : > { %v906_v16 = vpop.permute.xlu2 %905 }
 0x337   : > { %v904_v17 = vpop.permute.xlu1 %903 }
 0x338   : > { %v910_v18 = vsel %vm281_vm2, %v904_v17, %v906_v16 }
 0x339   : > { %v916_v19 = vadd.f32 %v910_v18, %v897_v9 }
 0x33b   : > { %922 = vrot.lane.b32.xlu2 %v916_v19, %s1149_s10 }
 0x33f   : > { %v908_v21 = vpop.permute.xlu1 %907 }
 0x340   : > { %v911_v22 = vsel %vm281_vm2, %v906_v16, %v908_v21  ;;  %v915_v23 = vsel %vm281_vm2, %v908_v21, 0.0 }
 0x341   : > { %v917_v24 = vadd.f32 %v911_v22, %v898_v10  ;;  %v918_v25 = vadd.f32 %v915_v23, %v899_v15 }
 0x343   : > { %926 = vrot.lane.b32.xlu1 %v918_v25, %s1149_s10  ;;  %924 = vrot.lane.b32.xlu0 %v917_v24, %s1149_s10 }
 0x395   : > { %v923_v26 = vpop.permute.xlu2 %922 }
 0x3b5   : > { %v927_v27 = vpop.permute.xlu1 %926  ;;  %v925_v28 = vpop.permute.xlu0 %924 }
 0x3b6   : > { %v934_v29 = vsel %vm327_vm14, %v927_v27, 0.0  ;;  %v929_v30 = vsel %vm327_vm14, %v923_v26, %v925_v28  ;;  %v930_v31 = vsel %vm327_vm14, %v925_v28, %v927_v27 }
 0x3b7   : > { %v937_v32 = vadd.f32 %v934_v29, %v918_v25  ;;  %v935_v33 = vadd.f32 %v929_v30, %v916_v19  ;;  %v936_v34 = vadd.f32 %v930_v31, %v917_v24 }
 0x3b9   : > { %940 = vst [vmem:[%s251_s26 + $0x10] sm:$0xff] %v937_v32 }
 0x3ba   : > { %938 = vst [vmem:[%s251_s26] sm:$0xff] %v935_v33 }
 0x3bb   : > { %939 = vst [vmem:[%s251_s26 + $0x8] sm:$0xff] %v936_v34 }
 0x3bc PF: > { %s16_s21 = sadd.s32 1, %s1140_s21  }
 0x3bd   : > { %p13_p4 = scmp.ge.s32.totalorder %s16_s21, 4  }
 0x3bf   :  { %15 = sbr.rel (!%p13_p4) target bundleno = 1 (0x1), region = 78 }

</bundles_post_ra>
